<compile_context>
chip_gen: v7x
topology: tpu7x:2x2x1
jax: 0.10.0
libtpu: 0.0.40
codegen_flags: <defaults>
</compile_context>

<pallas_src>
import jax
import jax.numpy as jnp
from jax.experimental import pallas as pl
from jax.experimental.pallas import tpu as pltpu

_LANE = 128
_MAX_LANE_TILE = 8192  # lane-tile cap (multiple of 128)


def _sublane_multiple(dtype) -> int:
    """Sublane packing: 8 for 32-bit, 16 for bf16/fp16, 32 for int8/fp8."""
    return max(8, 32 // jnp.dtype(dtype).itemsize)


def _vmem_budgets():
    """(per-tile budget, scoped-vmem base limit, vmem capacity) per generation."""
    try:
        cap = int(pltpu.get_tpu_info().vmem_capacity_bytes)
    except Exception:  # no TPU info available -> conservative (v7x-sized) budgets
        cap = 64 << 20
    if cap <= (64 << 20):            # v7x-class: 64 MiB VMEM per TensorCore
        return 6 << 20, 40 << 20, cap
    return 3 << 20, 16 << 20, cap    # v5e/v6e (128 MiB): fits default scoped VMEM


def _temp_scale_kernel(temp_ref, x_ref, o_ref):
    # temp_ref: (1,) f32 in SMEM; x_ref / o_ref: (tb, tc) tiles in VMEM.
    inv_t = 1.0 / temp_ref[0]                       # exact f32 scalar reciprocal
    # Compute in f32 (free on a memory-bound kernel), round once to out dtype.
    o_ref[...] = (x_ref[...] * inv_t).astype(o_ref.dtype)


def _choose_tiles(B, C, sub, itemsize, per_tile_budget):
    # Lane (class) tile: a multiple of 128 when C allows, else the full extent
    # (legal because the block dim then equals the full array dim).
    if C % _LANE == 0:
        tc = min(C, _MAX_LANE_TILE)
    else:
        tc = C
    # Row tile: as many rows as the per-tile budget allows, sublane-rounded.
    max_rows = max(1, per_tile_budget // max(1, tc * itemsize))
    if B <= sub:
        tb = B
    else:
        tb = max(sub, (min(max_rows, B) // sub) * sub)

    def steps(tb_, tc_):
        return pl.cdiv(B, tb_) * pl.cdiv(C, tc_)

    # Prefer >= 4 total grid steps so v7x's two TensorCores each get >= 2
    # pipelined iterations (keeps the first read / last writeback DMAs hidden).
    target = 4
    if steps(tb, tc) < target and B > sub:
        rows_needed = pl.cdiv(target, pl.cdiv(C, tc))
        tb_new = max(sub, (pl.cdiv(B, rows_needed) // sub) * sub)
        tb = min(tb, tb_new)
    if steps(tb, tc) < target and C % _LANE == 0 and C >= 2 * _LANE:
        cols_needed = pl.cdiv(target, pl.cdiv(B, tb))
        tc_new = max(_LANE, (pl.cdiv(C, cols_needed) // _LANE) * _LANE)
        tc = min(tc, tc_new)
    return tb, tc


def _scale_2d(x2d, temperature, *, donate=False):
    """Elementwise x2d / temperature for a 2-D (B, C) array."""
    B, C = x2d.shape
    dtype = x2d.dtype
    itemsize = jnp.dtype(dtype).itemsize
    sub = _sublane_multiple(dtype)
    per_tile_budget, vmem_base, vmem_cap = _vmem_budgets()

    tb, tc = _choose_tiles(B, C, sub, itemsize, per_tile_budget)
    grid = (pl.cdiv(B, tb), pl.cdiv(C, tc))

    # 2 arrays x 2 pipeline buffers, plus headroom for Mosaic internal scratch.
    tile_bytes = tb * tc * itemsize
    vmem_limit = max(vmem_base, 4 * tile_bytes + (2 << 20))
    vmem_limit = int(min(vmem_limit, vmem_cap - (8 << 20)))

    extra = {}
    if donate:
        # Caller donates batch_logits: scaled logits overwrite the input buffer.
        extra["input_output_aliases"] = {1: 0}

    return pl.pallas_call(
        _temp_scale_kernel,
        out_shape=jax.ShapeDtypeStruct((B, C), dtype),
        grid=grid,
        in_specs=[
            pl.BlockSpec(memory_space=pltpu.MemorySpace.SMEM),  # temperature (1,)
            pl.BlockSpec((tb, tc), lambda i, j: (i, j)),        # logits tile
        ],
        out_specs=pl.BlockSpec((tb, tc), lambda i, j: (i, j)),
        compiler_params=pltpu.CompilerParams(
            dimension_semantics=("parallel", "parallel"),
            vmem_limit_bytes=vmem_limit,
        ),
        cost_estimate=pl.CostEstimate(
            flops=B * C,
            transcendentals=0,
            bytes_accessed=2 * B * C * itemsize,
        ),
        **extra,
    )(temperature, x2d)


def optimal_temperature_scaling(batch_logits, temperature, *, donate=False):
    """batch_logits / temperature; temperature is the learned (1,) f32 parameter."""
    temperature = jnp.asarray(temperature, dtype=jnp.float32).reshape((1,))
    shape = batch_logits.shape
    if batch_logits.size == 0:
        return batch_logits
    if batch_logits.ndim == 0:
        x2d = batch_logits.reshape((1, 1))
    elif batch_logits.ndim == 1:
        # TODO(synk): a very long ragged 1-D input lands in a single (1, N) tile;
        # fine for typical logit vectors, revisit if N approaches VMEM capacity.
        x2d = batch_logits.reshape((1, shape[0]))
    else:
        # Collapse leading dims only (free, contiguous reshape); classes stay on
        # the lane axis, so no pad/slice HBM traffic is ever added.
        x2d = batch_logits.reshape((-1, shape[-1]))
    out2d = _scale_2d(x2d, temperature, donate=donate)
    return out2d.reshape(shape)


if __name__ == "__main__":
    key = jax.random.PRNGKey(0)
    # Matches nn.Parameter(torch.ones(1) * temperature) with temperature = 1.5.
    temperature = jnp.ones((1,), dtype=jnp.float32) * 1.5
    k1, k2, k3, k4 = jax.random.split(key, 4)

    # Case 1: standard lane-aligned f32 logits (B, C).
    x1 = jax.random.normal(k1, (8, 128), dtype=jnp.float32)
    out1 = jax.block_until_ready(optimal_temperature_scaling(x1, temperature))
    ref1 = x1 / temperature
    assert out1.shape == ref1.shape and out1.dtype == x1.dtype
    assert jnp.allclose(out1, ref1, atol=1e-6, rtol=1e-6)

    # Case 2: 3-D logits with a non-128-multiple class count (leading-dim
    # collapse + full-extent lane block; no pad/slice anywhere).
    x2 = jax.random.normal(k2, (2, 5, 10), dtype=jnp.float32)
    out2 = jax.block_until_ready(optimal_temperature_scaling(x2, temperature))
    ref2 = x2 / temperature
    assert out2.shape == ref2.shape and out2.dtype == x2.dtype
    assert jnp.allclose(out2, ref2, atol=1e-6, rtol=1e-6)

    # Case 3: bf16 logits (multiply in f32, single rounding back to bf16).
    x3 = jax.random.normal(k3, (16, 256), dtype=jnp.bfloat16)
    out3 = jax.block_until_ready(optimal_temperature_scaling(x3, temperature))
    ref3 = (x3.astype(jnp.float32) / temperature).astype(jnp.bfloat16)
    assert out3.shape == ref3.shape and out3.dtype == x3.dtype
    assert jnp.allclose(out3.astype(jnp.float32), ref3.astype(jnp.float32),
                        atol=1e-2, rtol=5e-2)

    # Case 4: 1-D ragged logits vector.
    x4 = jax.random.normal(k4, (37,), dtype=jnp.float32)
    out4 = jax.block_until_ready(optimal_temperature_scaling(x4, temperature))
    ref4 = x4 / temperature
    assert out4.shape == ref4.shape and out4.dtype == x4.dtype
    assert jnp.allclose(out4, ref4, atol=1e-6, rtol=1e-6)

    print("KERNEL_OK")
</pallas_src>

<mosaic_0001>
module attributes {stable_mosaic.version = 11 : i64} {
  func.func @_temp_scale_kernel(%arg0: i32, %arg1: i32, %arg2: memref<1xf32, #tpu.memory_space<smem>>, %arg3: memref<8x128xf32, #tpu.memory_space<vmem>>, %arg4: memref<8x128xf32, #tpu.memory_space<vmem>>) attributes {dimension_semantics = [#tpu.dimension_semantics<parallel>, #tpu.dimension_semantics<parallel>], iteration_bounds = array<i64: 1, 1>, scalar_prefetch = 0 : i64, scratch_operands = 0 : i64, tpu.core_type = #tpu.core_type<tc>, window_params = [{transform_indices = @transform_0, window_bounds = array<i64: 1>}, {transform_indices = @transform_1, window_bounds = array<i64: 8, 128>}, {transform_indices = @transform_2, window_bounds = array<i64: 8, 128>}]} {
    %c0 = arith.constant 0 : index
    %0 = memref.load %arg2[%c0] : memref<1xf32, #tpu.memory_space<smem>>
    %cst = arith.constant 1.000000e+00 : f32
    %1 = arith.divf %cst, %0 : f32
    %c0_0 = arith.constant 0 : index
    %c0_1 = arith.constant 0 : index
    %2 = vector.load %arg3[%c0_0, %c0_1] : memref<8x128xf32, #tpu.memory_space<vmem>>, vector<8x128xf32>
    %3 = vector.broadcast %1 : f32 to vector<8x128xf32>
    %4 = arith.mulf %2, %3 : vector<8x128xf32>
    %c0_2 = arith.constant 0 : index
    %c0_3 = arith.constant 0 : index
    %5 = vector.load %arg4[%c0_2, %c0_3] : memref<8x128xf32, #tpu.memory_space<vmem>>, vector<8x128xf32>
    tpu.vector_store %arg4[%c0_2, %c0_3], %4 {strides = array<i32>} : memref<8x128xf32, #tpu.memory_space<vmem>>, vector<8x128xf32>,
    return
  }
  func.func @transform_0(%arg0: i32, %arg1: i32) -> i32 {
    %c0_i32 = arith.constant 0 : i32
    %c0_i32_0 = arith.constant 0 : i32
    return %c0_i32 : i32
  }
  func.func @transform_1(%arg0: i32, %arg1: i32) -> (i32, i32) {
    %c0_i32 = arith.constant 0 : i32
    return %arg0, %arg1 : i32, i32
  }
  func.func @transform_2(%arg0: i32, %arg1: i32) -> (i32, i32) {
    %c0_i32 = arith.constant 0 : i32
    return %arg0, %arg1 : i32, i32
  }
}

</mosaic_0001>

<bundles_post_ra>
// kernel: tpu_custom_call.1
= control target key start
LH: loop header
LB: loop body
LE: loop exit
PB: predicated region body
PF: predicated region fallthrough
CT: control target
= control target key end

     0   :  { %8 = vsyncpa [#allocation4], 0  ;;  %s146_s0 = inlined_call_operand.<no memory space> [shape: f32[1], index: 0, kind: input, shape index: {}]   ;;  %s147_s1 = inlined_call_operand.hbm [shape: f32[8,128], index: 1, kind: input, shape index: {}]   ;;  %s148_s2 = inlined_call_operand.hbm [shape: f32[8,128], index: 2, kind: output, shape index: {}]  }
   0x1   :  { %9 = vsyncpa [#allocation5], 0  ;;  %s102_s9 = smov [#allocation3]   ;;  %s54_s13 = scalar_lea.hbm %s147_s1, 128 }
   0x2   :  { %s18_s10 = sshll.u32 %s102_s9, 4  ;;  %p55_p0 = scmp.ne.s32.totalorder %s147_s1, %s54_s13  ;;  %s19_s10 = int_to_ptr.vmem [resolvable:$true] %s18_s10 }
   0x3   :  { %p58_p1 = scmp.lt.u32.totalorder %s54_s13, %s147_s1 }
   0x5   :  { %p60_p2 = pnand %p58_p1, %p55_p0 }
   0x7   :  { %63 = shalt.err (!%p60_p2)
}
   0x8   :  { %s64_s18 = scalar_lea.vmem %s19_s10, 128  ;;  %p69_p4 = scmp.lt.s32.totalorder %s19_s10, %s19_s10 }
   0x9   :  { %p65_p3 = scmp.ne.s32.totalorder %s19_s10, %s64_s18  ;;  %p70_p5 = scmp.lt.s32.totalorder %s64_s18, %s64_s18 }
   0xb   :  { %p71_p6 = por %p70_p5, %p69_p4 }
   0xd   :  { %p72_p7 = pnand %p71_p6, %p65_p3 }
   0xf   :  { %75 = shalt.err (!%p72_p7)
}
  0x10   :  { %21 = dma.hbm_to_vmem [thread:$0]  %s147_s1, 128, %s19_s10, [#allocation4]   ;;  %v26_v0 = vstv %s146_s0 }
  0x11   :  { %98 = dma.done.wait [#allocation4], 128  }
  0x12   :  { %99 = vsyncadd [#allocation4], 4294967168  ;;  %52 = vrcp.f32 %v26_v0  ;;  %v29_v2 = vld [vmem:[#allocation3] sm:$0xff]  ;;  %s103_s23 = smov [#allocation6]  }
  0x13   :  { %s39_s24 = sshll.u32 %s103_s23, 4  ;;  %s40_s24 = int_to_ptr.vmem [resolvable:$true] %s39_s24 }
  0x14   :  { %s76_s26 = scalar_lea.vmem %s40_s24, 128  ;;  %p81_p9 = scmp.lt.s32.totalorder %s40_s24, %s40_s24 }
  0x15   :  { %p77_p8 = scmp.ne.s32.totalorder %s40_s24, %s76_s26  ;;  %p82_p10 = scmp.lt.s32.totalorder %s76_s26, %s76_s26 }
  0x17   :  { %p83_p11 = por %p82_p10, %p81_p9 }
  0x19   :  { %p84_p12 = pnand %p83_p11, %p77_p8 }
  0x1c   :  { %v53_v1 = vpop.eup %52 }
  0x1d   :  { %48 = vpush %v53_v1 }
  0x4e   :  { %s49_s25 = spop %48 }
  0x4f   :  { %v30_v3 = vstv %s49_s25 }
  0x50   :  { %v31_v4 = vmul.f32 %v30_v3, %v29_v2 }
  0x52   :  { %32 = vst [vmem:[#allocation6] sm:$0xff] %v31_v4 }
  0x53   :  { %87 = shalt.err (!%p84_p12)
}
  0x54   :  { %s88_s27 = scalar_lea.hbm %s148_s2, 128 }
  0x55   :  { %p89_p13 = scmp.ne.s32.totalorder %s148_s2, %s88_s27  ;;  %p92_p0 = scmp.lt.u32.totalorder %s88_s27, %s148_s2 }
  0x57   :  { %p94_p1 = pnand %p92_p0, %p89_p13 }
  0x59   :  { %97 = shalt.err (!%p94_p1)
}
  0x5a   :  { %42 = dma.vmem_to_hbm [thread:$0]  %s40_s24, 128, %s148_s2, [#allocation5]  }
  0x5b   :  { %100 = dma.done.wait [#allocation5], 128  }
  0x5c   :  { %101 = vsyncadd [#allocation5], 4294967168 }
  0x5d   :  { %46 = vsyncpa [#allocation4], 1 }
  0x5e   :  { %47 = vsyncpa [#allocation5], 1 }

</bundles_post_ra>
